<compile_context>
chip_gen: v6e
topology: v6e:2x2x1
jax: 0.10.0
libtpu: 0.0.40
codegen_flags: <defaults>
</compile_context>

<pallas_src>
import functools

import jax
import jax.numpy as jnp
from jax.experimental import pallas as pl
from jax.experimental.pallas import tpu as pltpu

# logical channel widths (match the PyTorch module)
C_IN, C1, C2, C3, C4 = 256, 200, 50, 50, 20
# zero-padded hidden widths (sublane friendly; C1P=208 per perf review)
C1P, C2P, C3P = 208, 64, 64


def _round_up(n, m):
    return ((n + m - 1) // m) * m


def _mfcc_kernel(x_ref, w1, b1, w2, b2, w3, b3, w4, b4, out_ref,
                 *, strip, n_strips, bf16_epilogue):
    """Fused 4x (1x1 conv == channel matmul) + hardtanh on one (C, tile_l) tile,
    processed in `n_strips` strips of `strip` lanes."""

    # Hoist the (small) weight / bias loads out of the strip loop
    # (JAX does not CSE these; keep them single-issue).
    w = (w1[...], w2[...], w3[...], w4[...])
    if bf16_epilogue:
        b_hid = (b1[...].astype(jnp.bfloat16),
                 b2[...].astype(jnp.bfloat16),
                 b3[...].astype(jnp.bfloat16))
    else:
        b_hid = (b1[...], b2[...], b3[...])
    b_last = b4[...]

    def hidden(h, wi, bi):
        # (Cout, Cin) @ (Cin, strip) on the MXU, f32 accumulation.
        y = jnp.dot(wi, h, preferred_element_type=jnp.float32)
        if bf16_epilogue:
            # v7x/v6e: bf16 VALU epilogue (2 elems/lane); next layer is bf16 anyway.
            return jnp.clip(y.astype(jnp.bfloat16) + bi, -1.0, 1.0)
        return jnp.clip(y + bi, -1.0, 1.0).astype(jnp.bfloat16)

    # Fully unrolled strip loop (n_strips <= 8): offsets are compile-time
    # constants (static ref slices), giving the LLO scheduler full visibility
    # while per-strip intermediates stay independent of the DMA tile size.
    for i in range(n_strips):
        sl = pl.ds(i * strip, strip)
        h = x_ref[:, sl].astype(jnp.bfloat16)        # (C_IN, strip) (no-op if bf16 input)
        h = hidden(h, w[0], b_hid[0])                # (C1P,  strip) bf16
        h = hidden(h, w[1], b_hid[1])                # (C2P,  strip) bf16
        h = hidden(h, w[2], b_hid[2])                # (C3P,  strip) bf16
        y = jnp.dot(w[3], h, preferred_element_type=jnp.float32)
        y = jnp.clip(y + b_last, -1.0, 1.0)          # final layer stays f32
        out_ref[:, sl] = y.astype(out_ref.dtype)


@functools.partial(jax.jit, static_argnames=("tile_l", "bf16_epilogue"))
def mfcc_net_forward(x_ncl, padded_params, *, tile_l=2048, bf16_epilogue=False):
    """x_ncl: (B, 256, L) float32 or bfloat16, PyTorch NCL layout.
    Returns (B, 20, L) float32."""
    B, C, L = x_ncl.shape
    assert C == C_IN
    assert tile_l % 128 == 0
    tile_l = min(tile_l, 4096)                      # cap per perf review

    # Lane-dense time tile; pad L up to a tile multiple (zeros, sliced off below).
    tl = min(tile_l, _round_up(L, 128))
    # Guarantee >= 2 grid steps where possible so both v7x TensorCores get work.
    if B * (_round_up(L, tl) // tl) < 2 and tl > 128:
        tl = max(128, _round_up((L + 1) // 2, 128))
    l_pad = _round_up(L, tl)
    if l_pad != L:
        x_ncl = jnp.pad(x_ncl, ((0, 0), (0, 0), (0, l_pad - L)))

    # In-kernel compute strip: largest of 512/256/128 dividing the tile.
    strip = 512
    while tl % strip:
        strip //= 2
    n_strips = tl // strip

    (w1, b1), (w2, b2), (w3, b3), (w4, b4) = padded_params

    def const_spec(arr):
        # VMEM-resident full block, same block index every grid step.
        return pl.BlockSpec(arr.shape, lambda b, l: (0, 0))

    # Explicit VMEM budget: double-buffered input/output tiles + resident
    # constants (incl. lane-padded bias blocks and their double buffers) +
    # per-strip intermediates.  Capped at 48 MiB to keep headroom under v7x's
    # 64 MiB physical VMEM; well inside v5e's/v6e's limits.
    in_bytes = jnp.dtype(x_ncl.dtype).itemsize
    vmem_limit = min(
        48 << 20,
        2 * C_IN * tl * in_bytes        # input tile, double buffered
        + 2 * 32 * tl * 4               # output tile (20 rows pad up), double buffered
        + (4 << 20),                    # weights/biases + strip intermediates + slack
    )

    kernel = functools.partial(_mfcc_kernel, strip=strip, n_strips=n_strips,
                               bf16_epilogue=bf16_epilogue)

    out = pl.pallas_call(
        kernel,
        out_shape=jax.ShapeDtypeStruct((B, C4, l_pad), jnp.float32),
        grid_spec=pltpu.PrefetchScalarGridSpec(
            num_scalar_prefetch=0,
            grid=(B, l_pad // tl),
            in_specs=[
                # activation tile: squeeze batch, channels on sublanes,
                # lane-dense time axis.
                pl.BlockSpec((None, C_IN, tl), lambda b, l: (b, 0, l)),
                const_spec(w1), const_spec(b1),
                const_spec(w2), const_spec(b2),
                const_spec(w3), const_spec(b3),
                const_spec(w4), const_spec(b4),
            ],
            out_specs=pl.BlockSpec((None, C4, tl), lambda b, l: (b, 0, l)),
        ),
        compiler_params=pltpu.CompilerParams(
            dimension_semantics=("parallel", "parallel"),
            vmem_limit_bytes=int(vmem_limit)),
    )(x_ncl, w1, b1, w2, b2, w3, b3, w4, b4)

    return out[:, :, :L] if l_pad != L else out


def init_params(key):
    """Logical (unpadded) params: w (Cout, Cin) f32, b (Cout,) f32,
    PyTorch-default-style uniform init."""
    dims = [(C1, C_IN), (C2, C1), (C3, C2), (C4, C3)]
    params = []
    for cout, cin in dims:
        key, kw, kb = jax.random.split(key, 3)
        scale = 1.0 / jnp.sqrt(jnp.float32(cin))
        w = jax.random.uniform(kw, (cout, cin), jnp.float32, -scale, scale)
        b = jax.random.uniform(kb, (cout,), jnp.float32, -scale, scale)
        params.append((w, b))
    return params


def prepare_params(logical_params):
    """Zero-pad weights/biases to lane/sublane-friendly widths; weights in bf16
    (MXU native rate), biases stay f32 (added after f32 accumulation).
    Padded rows/cols are exactly zero -> inert under hardtanh."""
    padded_dims = [(C1P, C_IN), (C2P, C1P), (C3P, C2P), (C4, C3P)]
    out = []
    for (w, b), (cop, cip) in zip(logical_params, padded_dims):
        co, ci = w.shape
        wp = jnp.zeros((cop, cip), jnp.float32).at[:co, :ci].set(w)
        bp = jnp.zeros((cop, 1), jnp.float32).at[:co, 0].set(b)
        out.append((wp.astype(jnp.bfloat16), bp))
    return out


def _reference_forward(x_ncl, logical_params):
    """Pure-JAX reference with matching bf16-in / f32-accumulate math."""
    h = x_ncl.astype(jnp.bfloat16)
    out = None
    for w, b in logical_params:
        y = jnp.einsum("oc,bcl->bol", w.astype(jnp.bfloat16), h,
                       preferred_element_type=jnp.float32)
        out = jnp.clip(y + b[None, :, None], -1.0, 1.0)
        h = out.astype(jnp.bfloat16)
    return out


if __name__ == "__main__":
    key = jax.random.PRNGKey(0)
    k_x, k_p = jax.random.split(key)

    B, L = 2, 8  # small demo shapes; input channels fixed at 256 by the module
    x = jax.random.normal(k_x, (B, C_IN, L), jnp.float32)

    logical_params = init_params(k_p)
    params = prepare_params(logical_params)

    ref = _reference_forward(x, logical_params)

    # Default path (f32 bias/hardtanh epilogue; safe on every generation).
    out = jax.block_until_ready(mfcc_net_forward(x, params))
    assert out.shape == (B, C4, L)
    assert jnp.max(jnp.abs(out - ref)) < 1e-2, float(jnp.max(jnp.abs(out - ref)))

    # v7x-oriented variant: bf16 bias/hardtanh epilogue for the hidden layers.
    out_v7x = jax.block_until_ready(
        mfcc_net_forward(x, params, bf16_epilogue=True))
    assert out_v7x.shape == (B, C4, L)
    assert jnp.max(jnp.abs(out_v7x - ref)) < 2e-2, float(jnp.max(jnp.abs(out_v7x - ref)))

    print("KERNEL_OK")
</pallas_src>

<mosaic_0001>
module attributes {stable_mosaic.version = 11 : i64} {
  func.func @_mfcc_kernel(%arg0: i32, %arg1: i32, %arg2: memref<1x256x128xf32, #tpu.memory_space<vmem>>, %arg3: memref<208x256xbf16, #tpu.memory_space<vmem>>, %arg4: memref<208x1xf32, #tpu.memory_space<vmem>>, %arg5: memref<64x208xbf16, #tpu.memory_space<vmem>>, %arg6: memref<64x1xf32, #tpu.memory_space<vmem>>, %arg7: memref<64x64xbf16, #tpu.memory_space<vmem>>, %arg8: memref<64x1xf32, #tpu.memory_space<vmem>>, %arg9: memref<20x64xbf16, #tpu.memory_space<vmem>>, %arg10: memref<20x1xf32, #tpu.memory_space<vmem>>, %arg11: memref<1x20x128xf32, #tpu.memory_space<vmem>>) attributes {dimension_semantics = [#tpu.dimension_semantics<parallel>, #tpu.dimension_semantics<parallel>], iteration_bounds = array<i64: 2, 1>, scalar_prefetch = 0 : i64, scratch_operands = 0 : i64, tpu.core_type = #tpu.core_type<tc>, window_params = [{transform_indices = @transform_0, window_bounds = array<i64: 1, 256, 128>}, {pipeline_mode = #tpu.pipeline_mode<synchronous>, transform_indices = @transform_1, window_bounds = array<i64: 208, 256>}, {pipeline_mode = #tpu.pipeline_mode<synchronous>, transform_indices = @transform_2, window_bounds = array<i64: 208, 1>}, {pipeline_mode = #tpu.pipeline_mode<synchronous>, transform_indices = @transform_3, window_bounds = array<i64: 64, 208>}, {pipeline_mode = #tpu.pipeline_mode<synchronous>, transform_indices = @transform_4, window_bounds = array<i64: 64, 1>}, {pipeline_mode = #tpu.pipeline_mode<synchronous>, transform_indices = @transform_5, window_bounds = array<i64: 64, 64>}, {pipeline_mode = #tpu.pipeline_mode<synchronous>, transform_indices = @transform_6, window_bounds = array<i64: 64, 1>}, {pipeline_mode = #tpu.pipeline_mode<synchronous>, transform_indices = @transform_7, window_bounds = array<i64: 20, 64>}, {pipeline_mode = #tpu.pipeline_mode<synchronous>, transform_indices = @transform_8, window_bounds = array<i64: 20, 1>}, {transform_indices = @transform_9, window_bounds = array<i64: 1, 20, 128>}]} {
    %c0 = arith.constant 0 : index
    %c0_0 = arith.constant 0 : index
    %0 = vector.load %arg3[%c0, %c0_0] : memref<208x256xbf16, #tpu.memory_space<vmem>>, vector<208x256xbf16>
    %c0_1 = arith.constant 0 : index
    %c0_2 = arith.constant 0 : index
    %1 = vector.load %arg5[%c0_1, %c0_2] : memref<64x208xbf16, #tpu.memory_space<vmem>>, vector<64x208xbf16>
    %c0_3 = arith.constant 0 : index
    %c0_4 = arith.constant 0 : index
    %2 = vector.load %arg7[%c0_3, %c0_4] : memref<64x64xbf16, #tpu.memory_space<vmem>>, vector<64x64xbf16>
    %c0_5 = arith.constant 0 : index
    %c0_6 = arith.constant 0 : index
    %3 = vector.load %arg9[%c0_5, %c0_6] : memref<20x64xbf16, #tpu.memory_space<vmem>>, vector<20x64xbf16>
    %c0_7 = arith.constant 0 : index
    %c0_8 = arith.constant 0 : index
    %4 = vector.load %arg4[%c0_7, %c0_8] : memref<208x1xf32, #tpu.memory_space<vmem>>, vector<208x1xf32>
    %c0_9 = arith.constant 0 : index
    %c0_10 = arith.constant 0 : index
    %5 = vector.load %arg6[%c0_9, %c0_10] : memref<64x1xf32, #tpu.memory_space<vmem>>, vector<64x1xf32>
    %c0_11 = arith.constant 0 : index
    %c0_12 = arith.constant 0 : index
    %6 = vector.load %arg8[%c0_11, %c0_12] : memref<64x1xf32, #tpu.memory_space<vmem>>, vector<64x1xf32>
    %c0_13 = arith.constant 0 : index
    %c0_14 = arith.constant 0 : index
    %7 = vector.load %arg10[%c0_13, %c0_14] : memref<20x1xf32, #tpu.memory_space<vmem>>, vector<20x1xf32>
    %c0_15 = arith.constant 0 : index
    %c0_16 = arith.constant 0 : index
    %c0_17 = arith.constant 0 : index
    %8 = vector.load %arg2[%c0_15, %c0_16, %c0_17] : memref<1x256x128xf32, #tpu.memory_space<vmem>>, vector<1x256x128xf32>
    %9 = vector.shape_cast %8 : vector<1x256x128xf32> to vector<256x128xf32>
    %10 = arith.truncf %9 : vector<256x128xf32> to vector<256x128xbf16>
    %cst = arith.constant dense<0.000000e+00> : vector<208x128xf32>
    %11 = tpu.matmul %0, %10, %cst {dimension_numbers = #tpu.dot_dimension_numbers<[1], [0], [0], [1], [0, 0, 1, 1], [], []>} : vector<208x256xbf16>, vector<256x128xbf16>, vector<208x128xf32> -> vector<208x128xf32>
    %12 = vector.broadcast %4 : vector<208x1xf32> to vector<208x128xf32>
    %13 = arith.addf %11, %12 : vector<208x128xf32>
    %cst_18 = arith.constant -1.000000e+00 : f32
    %cst_19 = arith.constant 1.000000e+00 : f32
    %14 = vector.broadcast %cst_18 : f32 to vector<208x128xf32>
    %15 = arith.maximumf %14, %13 : vector<208x128xf32>
    %16 = vector.broadcast %cst_19 : f32 to vector<208x128xf32>
    %17 = arith.minimumf %16, %15 : vector<208x128xf32>
    %18 = arith.truncf %17 : vector<208x128xf32> to vector<208x128xbf16>
    %cst_20 = arith.constant dense<0.000000e+00> : vector<64x128xf32>
    %19 = tpu.matmul %1, %18, %cst_20 {dimension_numbers = #tpu.dot_dimension_numbers<[1], [0], [0], [1], [0, 0, 1, 1], [], []>} : vector<64x208xbf16>, vector<208x128xbf16>, vector<64x128xf32> -> vector<64x128xf32>
    %20 = vector.broadcast %5 : vector<64x1xf32> to vector<64x128xf32>
    %21 = arith.addf %19, %20 : vector<64x128xf32>
    %cst_21 = arith.constant -1.000000e+00 : f32
    %cst_22 = arith.constant 1.000000e+00 : f32
    %22 = vector.broadcast %cst_21 : f32 to vector<64x128xf32>
    %23 = arith.maximumf %22, %21 : vector<64x128xf32>
    %24 = vector.broadcast %cst_22 : f32 to vector<64x128xf32>
    %25 = arith.minimumf %24, %23 : vector<64x128xf32>
    %26 = arith.truncf %25 : vector<64x128xf32> to vector<64x128xbf16>
    %cst_23 = arith.constant dense<0.000000e+00> : vector<64x128xf32>
    %27 = tpu.matmul %2, %26, %cst_23 {dimension_numbers = #tpu.dot_dimension_numbers<[1], [0], [0], [1], [0, 0, 1, 1], [], []>} : vector<64x64xbf16>, vector<64x128xbf16>, vector<64x128xf32> -> vector<64x128xf32>
    %28 = vector.broadcast %6 : vector<64x1xf32> to vector<64x128xf32>
    %29 = arith.addf %27, %28 : vector<64x128xf32>
    %cst_24 = arith.constant -1.000000e+00 : f32
    %cst_25 = arith.constant 1.000000e+00 : f32
    %30 = vector.broadcast %cst_24 : f32 to vector<64x128xf32>
    %31 = arith.maximumf %30, %29 : vector<64x128xf32>
    %32 = vector.broadcast %cst_25 : f32 to vector<64x128xf32>
    %33 = arith.minimumf %32, %31 : vector<64x128xf32>
    %34 = arith.truncf %33 : vector<64x128xf32> to vector<64x128xbf16>
    %cst_26 = arith.constant dense<0.000000e+00> : vector<20x128xf32>
    %35 = tpu.matmul %3, %34, %cst_26 {dimension_numbers = #tpu.dot_dimension_numbers<[1], [0], [0], [1], [0, 0, 1, 1], [], []>} : vector<20x64xbf16>, vector<64x128xbf16>, vector<20x128xf32> -> vector<20x128xf32>
    %36 = vector.broadcast %7 : vector<20x1xf32> to vector<20x128xf32>
    %37 = arith.addf %35, %36 : vector<20x128xf32>
    %cst_27 = arith.constant -1.000000e+00 : f32
    %cst_28 = arith.constant 1.000000e+00 : f32
    %38 = vector.broadcast %cst_27 : f32 to vector<20x128xf32>
    %39 = arith.maximumf %38, %37 : vector<20x128xf32>
    %40 = vector.broadcast %cst_28 : f32 to vector<20x128xf32>
    %41 = arith.minimumf %40, %39 : vector<20x128xf32>
    %c0_29 = arith.constant 0 : index
    %c0_30 = arith.constant 0 : index
    %c0_31 = arith.constant 0 : index
    %42 = vector.load %arg11[%c0_29, %c0_30, %c0_31] : memref<1x20x128xf32, #tpu.memory_space<vmem>>, vector<1x20x128xf32>
    %43 = vector.shape_cast %42 : vector<1x20x128xf32> to vector<20x128xf32>
    %44 = vector.shape_cast %41 : vector<20x128xf32> to vector<1x20x128xf32>
    tpu.vector_store %arg11[%c0_29, %c0_30, %c0_31], %44 {strides = array<i32>} : memref<1x20x128xf32, #tpu.memory_space<vmem>>, vector<1x20x128xf32>,
    return
  }
  func.func @transform_0(%arg0: i32, %arg1: i32) -> (i32, i32, i32) {
    %c0_i32 = arith.constant 0 : i32
    %c0_i32_0 = arith.constant 0 : i32
    return %arg0, %c0_i32, %arg1 : i32, i32, i32
  }
  func.func @transform_1(%arg0: i32, %arg1: i32) -> (i32, i32) {
    %c0_i32 = arith.constant 0 : i32
    %c0_i32_0 = arith.constant 0 : i32
    %c0_i32_1 = arith.constant 0 : i32
    return %c0_i32, %c0_i32_0 : i32, i32
  }
  func.func @transform_2(%arg0: i32, %arg1: i32) -> (i32, i32) {
    %c0_i32 = arith.constant 0 : i32
    %c0_i32_0 = arith.constant 0 : i32
    %c0_i32_1 = arith.constant 0 : i32
    return %c0_i32, %c0_i32_0 : i32, i32
  }
  func.func @transform_3(%arg0: i32, %arg1: i32) -> (i32, i32) {
    %c0_i32 = arith.constant 0 : i32
    %c0_i32_0 = arith.constant 0 : i32
    %c0_i32_1 = arith.constant 0 : i32
    return %c0_i32, %c0_i32_0 : i32, i32
  }
  func.func @transform_4(%arg0: i32, %arg1: i32) -> (i32, i32) {
    %c0_i32 = arith.constant 0 : i32
    %c0_i32_0 = arith.constant 0 : i32
    %c0_i32_1 = arith.constant 0 : i32
    return %c0_i32, %c0_i32_0 : i32, i32
  }
  func.func @transform_5(%arg0: i32, %arg1: i32) -> (i32, i32) {
    %c0_i32 = arith.constant 0 : i32
    %c0_i32_0 = arith.constant 0 : i32
    %c0_i32_1 = arith.constant 0 : i32
    return %c0_i32, %c0_i32_0 : i32, i32
  }
  func.func @transform_6(%arg0: i32, %arg1: i32) -> (i32, i32) {
    %c0_i32 = arith.constant 0 : i32
    %c0_i32_0 = arith.constant 0 : i32
    %c0_i32_1 = arith.constant 0 : i32
    return %c0_i32, %c0_i32_0 : i32, i32
  }
  func.func @transform_7(%arg0: i32, %arg1: i32) -> (i32, i32) {
    %c0_i32 = arith.constant 0 : i32
    %c0_i32_0 = arith.constant 0 : i32
    %c0_i32_1 = arith.constant 0 : i32
    return %c0_i32, %c0_i32_0 : i32, i32
  }
  func.func @transform_8(%arg0: i32, %arg1: i32) -> (i32, i32) {
    %c0_i32 = arith.constant 0 : i32
    %c0_i32_0 = arith.constant 0 : i32
    %c0_i32_1 = arith.constant 0 : i32
    return %c0_i32, %c0_i32_0 : i32, i32
  }
  func.func @transform_9(%arg0: i32, %arg1: i32) -> (i32, i32, i32) {
    %c0_i32 = arith.constant 0 : i32
    %c0_i32_0 = arith.constant 0 : i32
    return %arg0, %c0_i32, %arg1 : i32, i32, i32
  }
}

</mosaic_0001>

<bundles_post_ra>
// kernel: mfcc_net_forward.1
= control target key start
LH: loop header
LB: loop body
LE: loop exit
PB: predicated region body
PF: predicated region fallthrough
CT: control target
= control target key end

     0   :  { %s1868_s30 = smov 0   ;;  %s1870_s10 = smov 0   ;;  %s2282_s0 = inlined_call_operand.vmem [shape: f32[2,256,128], index: 0, kind: input, shape index: {}]   ;;  %s2283_s1 = inlined_call_operand.vmem [shape: bf16[208,256], index: 1, kind: input, shape index: {}]   ;;  %s2284_s2 = inlined_call_operand.vmem [shape: f32[208,1], index: 2, kind: input, shape index: {}]   ;;  %s2285_s3 = inlined_call_operand.vmem [shape: bf16[64,208], index: 3, kind: input, shape index: {}]   ;;  %s2286_s4 = inlined_call_operand.vmem [shape: f32[64,1], index: 4, kind: input, shape index: {}]   ;;  %s2287_s5 = inlined_call_operand.vmem [shape: bf16[64,64], index: 5, kind: input, shape index: {}]   ;;  %s2288_s6 = inlined_call_operand.vmem [shape: f32[64,1], index: 6, kind: input, shape index: {}]   ;;  %s2289_s7 = inlined_call_operand.vmem [shape: bf16[20,64], index: 7, kind: input, shape index: {}]   ;;  %s2290_s8 = inlined_call_operand.vmem [shape: f32[20,1], index: 8, kind: input, shape index: {}]   ;;  %s2291_s9 = inlined_call_operand.vmem [shape: f32[2,20,128], index: 9, kind: output, shape index: {}]  }
   0x1   :  { %s1872_s11 = smov 0  }
   0x2 LB: > { %s31_s12 = sadd.s32 1, %s1811_s10  ;;  %p1470_p0 = scmp.ge.s32.totalorder %s1815_s11, 1  ;;  %s1815_s11 = sphi %s1872_s11, %s19_s11   ;;  %s1811_s10 = sphi %s1870_s10, %s2293_s10   ;;  %s1807_s30 = sphi %s1868_s30, %s2292_s30  }
   0x3   : > { %p33_p1 = scmp.ge.s32.totalorder %s31_s12, 2  ;;  %p306_p2 = scmp.lt.s32.totalorder %s1815_s11, 3 }
   0x5   : > { %s2295_s12 = smov (%p33_p1, %s31_s12), 0  ;;  %p307_p3 = pnand %p1470_p0, %p306_p2 }
   0x6   : > { %p348_p4 = scmp.lt.s32.totalorder (!%p307_p3), %s1807_s30, 1 }
   0x7   : > { %310 = sbr.rel (%p307_p3) target bundleno = 1046 (0x416), region = 56 }
   0xc   : > { %v1738_v0 = vld [vmem:[%s2283_s1 + $0x4] ss:$8 sps:$4 sm:$0xff]   ;;  %v1817_v1 = vmov 0   ;;  %s2297_s30 = smov (!%p348_p4, %s1807_s30), 1  ;;  %v424_v30 = vld [vmem:[%s2284_s2 + $0x70] sm:$0xff]  ;;  %v425_v34 = vld [vmem:[%s2284_s2 + $0x78] sm:$0xff] }
   0xd   : > { %1734 = vset.pattern.permute.xlu0 %v1817_v1  ;;  %1735 = vset.pattern.permute.xlu1 %v1817_v1  ;;  %s1571_s15 = sshll.u32 %s2297_s30, 8  ;;  %v422_v35 = vld [vmem:[%s2284_s2 + $0x60] sm:$0xff]  ;;  %v423_v38 = vld [vmem:[%s2284_s2 + $0x68] sm:$0xff]  ;;  %v420_v43 = vld [vmem:[%s2284_s2 + $0x50] sm:$0xff]  ;;  %vm1041_vm0 = vcmask 654336   ;;  %vm1199_vm1 = vcmask 523264  }
   0xe   : > { %1054 = vmatprep.subr.bf16.mxu1 %v1817_v1  ;;  %795 = vmatprep.mubr.bf16.mxu0 %v1738_v0  ;;  %s1898_s18 = scalar_lea.vmem %s2282_s0, %s1571_s15  ;;  %v421_v46 = vld [vmem:[%s2284_s2 + $0x58] sm:$0xff]  ;;  %v418_v51 = vld [vmem:[%s2284_s2 + $0x40] sm:$0xff]  ;;  %v419_v54 = vld [vmem:[%s2284_s2 + $0x48] sm:$0xff]  ;;  %s1708_s17 = smul.u32 24, %s2297_s30 }
   0xf   : > { %v485_v2 = vld [vmem:[%s1898_s18 + $0xf0] sm:$0xff]  ;;  %v486_v3 = vld [vmem:[%s1898_s18 + $0xf8] sm:$0xff]  ;;  %v483_v7 = vld [vmem:[%s1898_s18 + $0xe0] sm:$0xff]  ;;  %575 = vperm.xlu0 %1734, %v424_v30   ;;  %565 = vperm.xlu1 %1735, %v422_v35  }
  0x10   : > { %v469_v4 = vld [vmem:[%s1898_s18 + $0x70] sm:$0xff]  ;;  %v502_v5 = vpack.c.bf16 %v486_v3, %v485_v2  ;;  %v470_v6 = vld [vmem:[%s1898_s18 + $0x78] sm:$0xff]  ;;  %v484_v8 = vld [vmem:[%s1898_s18 + $0xe8] sm:$0xff]  ;;  %s363_s21 = scalar_lea.vmem %s2291_s9, %s1708_s17 }
  0x11   : > { %v494_v9 = vpack.c.bf16 %v470_v6, %v469_v4  ;;  %v501_v10 = vpack.c.bf16 %v484_v8, %v483_v7  ;;  %v467_v11 = vld [vmem:[%s1898_s18 + $0x60] sm:$0xff]  ;;  %v468_v12 = vld [vmem:[%s1898_s18 + $0x68] sm:$0xff]  ;;  %v481_v13 = vld [vmem:[%s1898_s18 + $0xd0] sm:$0xff] }
  0x12   : > { %1572 = vmatprep.subr.bf16.mxu0 %v502_v5  ;;  %v482_v14 = vld [vmem:[%s1898_s18 + $0xd8] sm:$0xff]  ;;  %v493_v15 = vpack.c.bf16 %v468_v12, %v467_v11  ;;  %v465_v17 = vld [vmem:[%s1898_s18 + $0x50] sm:$0xff]  ;;  %v479_v19 = vld [vmem:[%s1898_s18 + $0xc0] sm:$0xff] }
  0x13   : > { %1573 = vmatpush3.bf16.msra.mxu0 %v494_v9  ;;  %v500_v16 = vpack.c.bf16 %v482_v14, %v481_v13  ;;  %v466_v18 = vld [vmem:[%s1898_s18 + $0x58] sm:$0xff]  ;;  %v480_v20 = vld [vmem:[%s1898_s18 + $0xc8] sm:$0xff]  ;;  %v463_v23 = vld [vmem:[%s1898_s18 + $0x40] sm:$0xff]  ;;  %580 = vperm.xlu0 %1734, %v425_v34  }
  0x14   : > { %1574 = vmatprep.subr.bf16.mxu0 %v501_v10  ;;  %v492_v21 = vpack.c.bf16 %v466_v18, %v465_v17  ;;  %v499_v22 = vpack.c.bf16 %v480_v20, %v479_v19  ;;  %v464_v24 = vld [vmem:[%s1898_s18 + $0x48] sm:$0xff]  ;;  %v477_v25 = vld [vmem:[%s1898_s18 + $0xb0] sm:$0xff]  ;;  %v478_v26 = vld [vmem:[%s1898_s18 + $0xb8] sm:$0xff]  ;;  %570 = vperm.xlu1 %1735, %v423_v38  }
  0x15   : > { %v491_v27 = vpack.c.bf16 %v464_v24, %v463_v23  ;;  %v461_v28 = vld [vmem:[%s1898_s18 + $0x30] sm:$0xff]  ;;  %v462_v29 = vld [vmem:[%s1898_s18 + $0x38] sm:$0xff]  ;;  %v498_v31 = vpack.c.bf16 %v478_v26, %v477_v25  ;;  %v475_v32 = vld [vmem:[%s1898_s18 + $0xa0] sm:$0xff] }
  0x16   : > { %v476_v33 = vld [vmem:[%s1898_s18 + $0xa8] sm:$0xff]  ;;  %v490_v36 = vpack.c.bf16 %v462_v29, %v461_v28  ;;  %v459_v37 = vld [vmem:[%s1898_s18 + $0x20] sm:$0xff]  ;;  %v473_v41 = vld [vmem:[%s1898_s18 + $0x90] sm:$0xff] }
  0x17   : > { %1575 = vmatpush3.bf16.msra.mxu0 %v493_v15  ;;  %v497_v39 = vpack.c.bf16 %v476_v33, %v475_v32  ;;  %v460_v40 = vld [vmem:[%s1898_s18 + $0x28] sm:$0xff]  ;;  %v474_v42 = vld [vmem:[%s1898_s18 + $0x98] sm:$0xff]  ;;  %v457_v45 = vld [vmem:[%s1898_s18 + $0x10] sm:$0xff]  ;;  %555 = vperm.xlu0 %1734, %v420_v43  }
  0x18   : > { %1576 = vmatprep.subr.bf16.mxu0 %v500_v16  ;;  %v489_v44 = vpack.c.bf16 %v460_v40, %v459_v37  ;;  %v496_v47 = vpack.c.bf16 %v474_v42, %v473_v41  ;;  %v458_v48 = vld [vmem:[%s1898_s18 + $0x18] sm:$0xff]  ;;  %v471_v49 = vld [vmem:[%s1898_s18 + $0x80] sm:$0xff]  ;;  %v472_v50 = vld [vmem:[%s1898_s18 + $0x88] sm:$0xff]  ;;  %560 = vperm.xlu1 %1735, %v421_v46  }
  0x19   : > { %v488_v52 = vpack.c.bf16 %v458_v48, %v457_v45  ;;  %v455_v53 = vld [vmem:[%s1898_s18] sm:$0xff]  ;;  %v495_v55 = vpack.c.bf16 %v472_v50, %v471_v49  ;;  %v456_v56 = vld [vmem:[%s1898_s18 + $0x8] sm:$0xff]  ;;  %v416_v57 = vld [vmem:[%s2284_s2 + $0x30] sm:$0xff] }
  0x1a   : > { %v487_v58 = vpack.c.bf16 %v456_v56, %v455_v53  ;;  %v417_v59 = vld [vmem:[%s2284_s2 + $0x38] sm:$0xff]  ;;  %v414_v60 = vld [vmem:[%s2284_s2 + $0x20] sm:$0xff]  ;;  %v415_v63 = vld [vmem:[%s2284_s2 + $0x28] sm:$0xff] }
  0x1b   : > { %1577 = vmatpush3.bf16.msra.mxu0 %v492_v21  ;;  %545 = vperm.xlu0 %1734, %v418_v51   ;;  %v1736_v61 = vld [vmem:[%s2283_s1] ss:$8 sps:$4 sm:$0xff]   ;;  %v1739_v62 = vld [vmem:[%s2283_s1 + $0x14] ss:$8 sps:$4 sm:$0xff]   ;;  %v1741_v4 = vld [vmem:[%s2283_s1 + $0x10] ss:$8 sps:$4 sm:$0xff]  }
  0x1c   : > { %1578 = vmatprep.subr.bf16.mxu0 %v499_v22  ;;  %550 = vperm.xlu1 %1735, %v419_v54   ;;  %v412_v0 = vld [vmem:[%s2284_s2 + $0x10] sm:$0xff]  ;;  %v413_v2 = vld [vmem:[%s2284_s2 + $0x18] sm:$0xff]  ;;  %v410_v3 = vld [vmem:[%s2284_s2] sm:$0xff] }
  0x1d   : > { %v1742_v5 = vld [vmem:[%s2283_s1 + $0x24] ss:$8 sps:$4 sm:$0xff]   ;;  %v432_v9 = vld [vmem:[%s2284_s2 + $0xb0] sm:$0xff]  ;;  %v1744_v10 = vld [vmem:[%s2283_s1 + $0x20] ss:$8 sps:$4 sm:$0xff]  }
  0x1e   : > { %v411_v6 = vld [vmem:[%s2284_s2 + $0x8] sm:$0xff]  ;;  %v434_v7 = vld [vmem:[%s2284_s2 + $0xc0] sm:$0xff]  ;;  %v1745_v11 = vld [vmem:[%s2283_s1 + $0x34] ss:$8 sps:$4 sm:$0xff]  }
  0x1f   : > { %1579 = vmatpush3.bf16.msra.mxu0 %v491_v27  ;;  %535 = vperm.xlu0 %1734, %v416_v57   ;;  %v435_v8 = vld [vmem:[%s2284_s2 + $0xc8] sm:$0xff]  ;;  %v433_v12 = vld [vmem:[%s2284_s2 + $0xb8] sm:$0xff]  ;;  %v430_v13 = vld [vmem:[%s2284_s2 + $0xa0] sm:$0xff] }
  0x20   : > { %1580 = vmatprep.subr.bf16.mxu0 %v498_v31  ;;  %540 = vperm.xlu1 %1735, %v417_v59   ;;  %v431_v14 = vld [vmem:[%s2284_s2 + $0xa8] sm:$0xff]  ;;  %v428_v15 = vld [vmem:[%s2284_s2 + $0x90] sm:$0xff]  ;;  %v429_v18 = vld [vmem:[%s2284_s2 + $0x98] sm:$0xff] }
  0x21   : > { %v1747_v16 = vld [vmem:[%s2283_s1 + $0x30] ss:$8 sps:$4 sm:$0xff]   ;;  %v1748_v17 = vld [vmem:[%s2283_s1 + $0x44] ss:$8 sps:$4 sm:$0xff]   ;;  %v1750_v22 = vld [vmem:[%s2283_s1 + $0x40] ss:$8 sps:$4 sm:$0xff]  }
  0x22   : > { %v426_v19 = vld [vmem:[%s2284_s2 + $0x80] sm:$0xff]  ;;  %v427_v20 = vld [vmem:[%s2284_s2 + $0x88] sm:$0xff]  ;;  %v442_v21 = vld [vmem:[%s2286_s4 + $0x30] sm:$0xff] }
  0x23   : > { %1581 = vmatpush3.bf16.msra.mxu0 %v490_v36  ;;  %525 = vperm.xlu0 %1734, %v414_v60   ;;  %v1751_v23 = vld [vmem:[%s2283_s1 + $0x54] ss:$8 sps:$4 sm:$0xff]   ;;  %v440_v25 = vld [vmem:[%s2286_s4 + $0x20] sm:$0xff]  ;;  %v441_v26 = vld [vmem:[%s2286_s4 + $0x28] sm:$0xff] }
  0x24   : > { %1582 = vmatprep.subr.bf16.mxu0 %v497_v39  ;;  %530 = vperm.xlu1 %1735, %v415_v63   ;;  %v443_v24 = vld [vmem:[%s2286_s4 + $0x38] sm:$0xff]  ;;  %v438_v27 = vld [vmem:[%s2286_s4 + $0x10] sm:$0xff]  ;;  %v1754_v29 = vld [vmem:[%s2283_s1 + $0x64] ss:$8 sps:$4 sm:$0xff]  }
  0x25   : > { %v1753_v28 = vld [vmem:[%s2283_s1 + $0x50] ss:$8 sps:$4 sm:$0xff]   ;;  %v436_v31 = vld [vmem:[%s2286_s4] sm:$0xff]  ;;  %v437_v32 = vld [vmem:[%s2286_s4 + $0x8] sm:$0xff] }
  0x26   : > { %v439_v30 = vld [vmem:[%s2286_s4 + $0x18] sm:$0xff]  ;;  %v450_v33 = vld [vmem:[%s2288_s6 + $0x30] sm:$0xff]  ;;  %v1756_v34 = vld [vmem:[%s2283_s1 + $0x60] ss:$8 sps:$4 sm:$0xff]  }
  0x27   : > { %1583 = vmatpush3.bf16.msra.mxu0 %v489_v44  ;;  %515 = vperm.xlu0 %1734, %v412_v0   ;;  %v1757_v35 = vld [vmem:[%s2283_s1 + $0x74] ss:$8 sps:$4 sm:$0xff]   ;;  %v448_v37 = vld [vmem:[%s2288_s6 + $0x20] sm:$0xff]  ;;  %v449_v38 = vld [vmem:[%s2288_s6 + $0x28] sm:$0xff] }
  0x28   : > { %1584 = vmatprep.subr.bf16.mxu0 %v496_v47  ;;  %520 = vperm.xlu1 %1735, %v413_v2   ;;  %v451_v36 = vld [vmem:[%s2288_s6 + $0x38] sm:$0xff]  ;;  %v446_v39 = vld [vmem:[%s2288_s6 + $0x10] sm:$0xff]  ;;  %v1760_v41 = vld [vmem:[%s2283_s1 + $0x84] ss:$8 sps:$4 sm:$0xff]  }
  0x29   : > { %v1759_v40 = vld [vmem:[%s2283_s1 + $0x70] ss:$8 sps:$4 sm:$0xff]   ;;  %v444_v43 = vld [vmem:[%s2288_s6] sm:$0xff]  ;;  %v445_v44 = vld [vmem:[%s2288_s6 + $0x8] sm:$0xff] }
  0x2a   : > { %v447_v42 = vld [vmem:[%s2288_s6 + $0x18] sm:$0xff]  ;;  %v452_v45 = vld [vmem:[%s2290_s8] sm:$0xff]  ;;  %v453_v48 = vld [vmem:[%s2290_s8 + $0x8] sm:$0xff] }
  0x2b   : > { %1585 = vmatpush3.bf16.msra.mxu0 %v488_v52  ;;  %505 = vperm.xlu0 %1734, %v410_v3   ;;  %v1762_v46 = vld [vmem:[%s2283_s1 + $0x80] ss:$8 sps:$4 sm:$0xff]   ;;  %v1763_v47 = vld [vmem:[%s2283_s1 + $0x94] ss:$8 sps:$4 sm:$0xff]   ;;  %v454_v49 = vld [vmem:[%s2290_s8 + $0x10] sm:$0xf] }
  0x2c   : > { %1586 = vmatprep.subr.bf16.mxu0 %v495_v55  ;;  %510 = vperm.xlu1 %1735, %v411_v6   ;;  %v1765_v50 = vld [vmem:[%s2283_s1 + $0x90] ss:$8 sps:$4 sm:$0xff]   ;;  %v1766_v51 = vld [vmem:[%s2283_s1 + $0xa4] ss:$8 sps:$4 sm:$0xff]   ;;  %v1768_v52 = vld [vmem:[%s2283_s1 + $0xa0] ss:$8 sps:$4 sm:$0xff]  }
  0x2d   : > { %v1769_v53 = vld [vmem:[%s2283_s1 + $0xb4] ss:$8 sps:$4 sm:$0xff]   ;;  %v1771_v54 = vld [vmem:[%s2283_s1 + $0xb0] ss:$8 sps:$4 sm:$0xff]   ;;  %v1772_v55 = vld [vmem:[%s2283_s1 + $0xc4] ss:$8 sps:$4 sm:$0xff]  }
  0x2e   : > { %v1774_v56 = vld [vmem:[%s2283_s1 + $0xc0] ss:$8 sps:$4 sm:$0xff]  }
  0x2f   : > { %1587 = vmatpush3.bf16.msra.mxu0 %v487_v58  ;;  %625 = vperm.xlu0 %1734, %v434_v7   ;;  %v1777_v7 = vld [vmem:[%s2285_s3 + $0x4] ss:$8 sps:$4 sm:$0xff]  }
  0x30   : > { %630 = vperm.xlu1 %1735, %v435_v8   ;;  %1534 = vmatprep.mubr.msk.bf16.mxu1 %vm1041_vm0, %v1777_v7 }
  0x32   : > { %796 = vmatmul.mubr.bf16.vlgmr.msra.gmra.mxu0 %v1736_v61 }
  0x33   : > { %803 = vmatprep.mubr.bf16.mxu0 %v1739_v62  ;;  %615 = vperm.xlu0 %1734, %v432_v9  }
  0x34   : > { %620 = vperm.xlu1 %1735, %v433_v12  }
  0x37   : > { %605 = vperm.xlu0 %1734, %v430_v13  }
  0x38   : > { %610 = vperm.xlu1 %1735, %v431_v14  }
  0x3a   : > { %804 = vmatmul.mubr.bf16.gmra.mxu0 %v1741_v4 }
  0x3b   : > { %811 = vmatprep.mubr.bf16.mxu0 %v1742_v5  ;;  %595 = vperm.xlu0 %1734, %v428_v15  }
  0x3c   : > { %600 = vperm.xlu1 %1735, %v429_v18  }
  0x3f   : > { %585 = vperm.xlu0 %1734, %v426_v19  }
  0x40   : > { %590 = vperm.xlu1 %1735, %v427_v20  }
  0x42   : > { %812 = vmatmul.mubr.bf16.gmra.mxu0 %v1744_v10 }
  0x43   : > { %819 = vmatprep.mubr.bf16.mxu0 %v1745_v11  ;;  %997 = vperm.xlu0 %1734, %v442_v21  }
  0x44   : > { %1002 = vperm.xlu1 %1735, %v443_v24  }
  0x47   : > { %987 = vperm.xlu0 %1734, %v440_v25  }
  0x48   : > { %992 = vperm.xlu1 %1735, %v441_v26  }
  0x4a   : > { %820 = vmatmul.mubr.bf16.gmra.mxu0 %v1747_v16 }
  0x4b   : > { %827 = vmatprep.mubr.bf16.mxu0 %v1748_v17  ;;  %977 = vperm.xlu0 %1734, %v438_v27  }
  0x4c   : > { %982 = vperm.xlu1 %1735, %v439_v30  }
  0x4f   : > { %967 = vperm.xlu0 %1734, %v436_v31  }
  0x50   : > { %972 = vperm.xlu1 %1735, %v437_v32  }
  0x52   : > { %828 = vmatmul.mubr.bf16.gmra.mxu0 %v1750_v22 }
  0x53   : > { %835 = vmatprep.mubr.bf16.mxu0 %v1751_v23  ;;  %1171 = vperm.xlu0 %1734, %v450_v33  }
  0x54   : > { %1176 = vperm.xlu1 %1735, %v451_v36  }
  0x57   : > { %1161 = vperm.xlu0 %1734, %v448_v37  }
  0x58   : > { %1166 = vperm.xlu1 %1735, %v449_v38  }
  0x5a   : > { %836 = vmatmul.mubr.bf16.gmra.mxu0 %v1753_v28 }
  0x5b   : > { %843 = vmatprep.mubr.bf16.mxu0 %v1754_v29  ;;  %1151 = vperm.xlu0 %1734, %v446_v39  }
  0x5c   : > { %1156 = vperm.xlu1 %1735, %v447_v42  }
  0x5f   : > { %1141 = vperm.xlu0 %1734, %v444_v43  }
  0x60   : > { %1146 = vperm.xlu1 %1735, %v445_v44  }
  0x62   : > { %844 = vmatmul.mubr.bf16.gmra.mxu0 %v1756_v34 }
  0x63   : > { %851 = vmatprep.mubr.bf16.mxu0 %v1757_v35  ;;  %1299 = vperm.xlu0 %1734, %v452_v45  }
  0x64   : > { %1304 = vperm.xlu1 %1735, %v453_v48  }
  0x67   : > { %1309 = vperm.xlu0 %1734, %v454_v49  }
  0x6a   : > { %852 = vmatmul.mubr.bf16.gmra.mxu0 %v1759_v40 }
  0x6b   : > { %859 = vmatprep.mubr.bf16.mxu0 %v1760_v41 }
  0x72   : > { %860 = vmatmul.mubr.bf16.gmra.mxu0 %v1762_v46 }
  0x73   : > { %867 = vmatprep.mubr.bf16.mxu0 %v1763_v47 }
  0x7a   : > { %868 = vmatmul.mubr.bf16.gmra.mxu0 %v1765_v50 }
  0x7b   : > { %875 = vmatprep.mubr.bf16.mxu0 %v1766_v51 }
  0x82   : > { %876 = vmatmul.mubr.bf16.gmra.mxu0 %v1768_v52 }
  0x83   : > { %883 = vmatprep.mubr.bf16.mxu0 %v1769_v53 }
  0x8a   : > { %884 = vmatmul.mubr.bf16.gmra.mxu0 %v1771_v54  ;;  %v2142_v57 = vpop.permute.xlu0 %575  ;;  %v2144_v58 = vpop.permute.xlu1 %565 }
  0x8b   : > { %891 = vmatprep.mubr.bf16.mxu0 %v1772_v55 }
  0x8e   : > { %v2146_v59 = vpop.permute.xlu0 %580 }
  0x8f   : > { %v2148_v60 = vpop.permute.xlu1 %570 }
  0x92   : > { %892 = vmatmul.mubr.bf16.gmra.mxu0 %v1774_v56  ;;  %v2150_v61 = vpop.permute.xlu0 %555 }
  0x93   : > { %v2152_v62 = vpop.permute.xlu1 %560 }
  0x96   : > { %v2154_v63 = vpop.permute.xlu0 %545 }
  0x97   : > { %v2156_v0 = vpop.permute.xlu1 %550 }
  0x9a   : > { %v2158_v2 = vpop.permute.xlu0 %535 }
  0x9b   : > { %v2160_v3 = vpop.permute.xlu1 %540 }
  0x9e   : > { %v2162_v4 = vpop.permute.xlu0 %525 }
  0x9f   : > { %v2164_v5 = vpop.permute.xlu1 %530 }
  0xa2   : > { %v516_v6 = vpop.permute.xlu0 %515 }
  0xa3   : > { %v521_v9 = vpop.permute.xlu1 %520 }
  0xa6   : > { %v506_v12 = vpop.permute.xlu0 %505 }
  0xa7   : > { %v511_v15 = vpop.permute.xlu1 %510 }
  0xf2   : > { %v1588_v8 = vpop.f32.mrf.mxu0 }
  0xf4   : > { %v1589_v10 = vpop.f32.mrf.mxu0 }
  0xf5   : > { %v1590_v11 = vadd.f32 %v1589_v10, %v1588_v8 }
  0xf6   : > { %v1591_v13 = vpop.f32.mrf.mxu0 }
  0xf7   : > { %v798_v16 = vadd.f32 %v1590_v11, %v506_v12 }
  0xf8   : > { %v1592_v14 = vpop.f32.mrf.mxu0 }
  0xf9   : > { %v1593_v17 = vadd.f32 %v1592_v14, %v1591_v13  ;;  %v1500_v21 = vclamps-f32 %v798_v16, 1.0 }
  0xfa   : > { %v1594_v18 = vpop.f32.mrf.mxu0 }
  0xfb   : > { %v801_v19 = vadd.f32 %v1593_v17, %v511_v15 }
  0xfc   : > { %v1595_v20 = vpop.f32.mrf.mxu0 }
  0xfd   : > { %v1501_v22 = vclamps-f32 %v801_v19, 1.0  ;;  %v1596_v23 = vadd.f32 %v1595_v20, %v1594_v18 }
  0xfe   : > { %v1597_v24 = vpop.f32.mrf.mxu0 }
  0xff   : > { %v2170_v25 = vpack.c.bf16 %v1501_v22, %v1500_v21  ;;  %v806_v27 = vadd.f32 %v1596_v23, %v516_v6 }
 0x100   : > { %v1598_v26 = vpop.f32.mrf.mxu0 }
 0x101   : > { %v1599_v28 = vadd.f32 %v1598_v26, %v1597_v24  ;;  %v1502_v32 = vclamps-f32 %v806_v27, 1.0 }
 0x102   : > { %v1600_v29 = vpop.f32.mrf.mxu0 }
 0x103   : > { %v809_v30 = vadd.f32 %v1599_v28, %v521_v9 }
 0x104   : > { %v1601_v31 = vpop.f32.mrf.mxu0 }
 0x105   : > { %v1503_v33 = vclamps-f32 %v809_v30, 1.0  ;;  %v2172_v34 = vadd.f32 %v1601_v31, %v1600_v29 }
 0x106   : > { %v1603_v35 = vpop.f32.mrf.mxu0 }
 0x107   : > { %v2174_v36 = vpack.c.bf16 %v1503_v33, %v1502_v32 }
 0x108   : > { %v1604_v37 = vpop.f32.mrf.mxu0 }
 0x10a   : > { %v1606_v38 = vpop.f32.mrf.mxu0 }
 0x10c   : > { %v1607_v39 = vpop.f32.mrf.mxu0 }
 0x10e   : > { %v1609_v40 = vpop.f32.mrf.mxu0 }
 0x110   : > { %v1610_v41 = vpop.f32.mrf.mxu0 }
 0x112   : > { %v1612_v42 = vpop.f32.mrf.mxu0 }
 0x114   : > { %v1613_v43 = vpop.f32.mrf.mxu0 }
 0x115   : > { %v1614_v27 = vadd.f32 %v1613_v43, %v1612_v42 }
 0x116   : > { %v1615_v44 = vpop.f32.mrf.mxu0 }
 0x117   : > { %v830_v33 = vadd.f32 %v1614_v27, %v2154_v63 }
 0x118   : > { %v1616_v45 = vpop.f32.mrf.mxu0 }
 0x119   : > { %v1617_v22 = vadd.f32 %v1616_v45, %v1615_v44 }
 0x11a   : > { %v1618_v46 = vpop.f32.mrf.mxu0 }
 0x11b   : > { %v833_v29 = vadd.f32 %v1617_v22, %v2156_v0 }
 0x11c   : > { %v1619_v47 = vpop.f32.mrf.mxu0 }
 0x11d   : > { %v1620_v17 = vadd.f32 %v1619_v47, %v1618_v46  ;;  %v1509_v45 = vclamps-f32 %v833_v29, 1.0 }
 0x11e   : > { %v1621_v48 = vpop.f32.mrf.mxu0 }
 0x120   : > { %v1622_v49 = vpop.f32.mrf.mxu0 }
 0x121   : > { %v1623_v13 = vadd.f32 %v1622_v49, %v1621_v48 }
 0x122   : > { %v1624_v50 = vpop.f32.mrf.mxu0 }
 0x124   : > { %v1625_v51 = vpop.f32.mrf.mxu0 }
 0x125   : > { %v1626_v9 = vadd.f32 %v1625_v51, %v1624_v50 }
 0x126   : > { %v1627_v52 = vpop.f32.mrf.mxu0 }
 0x127   : > { %v846_v18 = vadd.f32 %v1626_v9, %v2144_v58  ;;  %v1611_v58 = vadd.f32 %v1610_v41, %v1609_v40  ;;  %v1508_v41 = vclamps-f32 %v830_v33, 1.0 }
 0x128   : > { %v1628_v53 = vpop.f32.mrf.mxu0 }
 0x129   : > { %v1629_v7 = vadd.f32 %v1628_v53, %v1627_v52  ;;  %v825_v43 = vadd.f32 %v1611_v58, %v2160_v3 }
 0x12a   : > { %v1630_v54 = vpop.f32.mrf.mxu0 }
 0x12b   : > { %v849_v14 = vadd.f32 %v1629_v7, %v2148_v60  ;;  %v838_v60 = vadd.f32 %v1620_v17, %v2150_v61  ;;  %v1605_v61 = vadd.f32 %v1604_v37, %v1603_v35  ;;  %v814_v35 = vadd.f32 %v2172_v34, %v2162_v4  ;;  %v626_v4 = vpop.permute.xlu0 %625 }
 0x12c   : > { %v1631_v55 = vpop.f32.mrf.mxu0 }
 0x12d   : > { %v1632_v56 = vadd.f32 %v1631_v55, %v1630_v54  ;;  %v1513_v23 = vclamps-f32 %v849_v14, 1.0  ;;  %v1510_v44 = vclamps-f32 %v838_v60, 1.0  ;;  %v817_v63 = vadd.f32 %v1605_v61, %v2164_v5  ;;  %v631_v54 = vpop.permute.xlu1 %630 }
 0x12e   : > { %v1633_v6 = vpop.f32.mrf.mxu0  ;;  %v1504_v51 = vclamps-f32 %v814_v35, 1.0  ;;  %v1780_v35 = vld [vmem:[%s2285_s3 + $0x10] ss:$8 sps:$4 sm:$0xff]  }
 0x12f   : > { %v854_v10 = vadd.f32 %v1632_v56, %v2142_v57  ;;  %v841_v57 = vadd.f32 %v1623_v13, %v2152_v62  ;;  %v1608_v62 = vadd.f32 %v1607_v39, %v1606_v38  ;;  %v1507_v38 = vclamps-f32 %v825_v43, 1.0  ;;  %v616_v9 = vpop.permute.xlu0 %615 }
 0x130   : > { %v1634_v8 = vpop.f32.mrf.mxu0  ;;  %v956_v39 = vpack.c.bf16 %v1509_v45, %v1508_v41  ;;  %v1505_v49 = vclamps-f32 %v817_v63, 1.0 }
 0x131   : > { %v1635_v11 = vadd.f32 %v1634_v8, %v1633_v6  ;;  %v1514_v19 = vclamps-f32 %v854_v10, 1.0  ;;  %v1511_v30 = vclamps-f32 %v841_v57, 1.0  ;;  %v822_v0 = vadd.f32 %v1608_v62, %v2158_v2  ;;  %v621_v6 = vpop.permute.xlu1 %620 }
 0x132   : > { %v2177_v12 = vpop.f32.mrf.mxu0  ;;  %v954_v5 = vpack.c.bf16 %v1505_v49, %v1504_v51  ;;  %v1786_v49 = vld [vmem:[%s2285_s3 + $0x30] ss:$8 sps:$4 sm:$0xff]  }
 0x133   : > { %v857_v15 = vadd.f32 %v1635_v11, %v2146_v59  ;;  %v1512_v59 = vclamps-f32 %v846_v18, 1.0  ;;  %v957_v46 = vpack.c.bf16 %v1511_v30, %v1510_v44  ;;  %v1506_v37 = vclamps-f32 %v822_v0, 1.0  ;;  %v606_v22 = vpop.permute.xlu0 %605 }
 0x134   : > { %v2181_v16 = vpop.f32.mrf.mxu0 }
 0x135   : > { %v1515_v20 = vclamps-f32 %v857_v15, 1.0  ;;  %v958_v31 = vpack.c.bf16 %v1513_v23, %v1512_v59  ;;  %v955_v2 = vpack.c.bf16 %v1507_v38, %v1506_v37  ;;  %v611_v18 = vpop.permute.xlu1 %610  ;;  %v1783_v37 = vld [vmem:[%s2285_s3 + $0x20] ss:$8 sps:$4 sm:$0xff]  }
 0x136   : > { %v2184_v21 = vpop.f32.mrf.mxu0 }
 0x137   : > { %v959_v24 = vpack.c.bf16 %v1515_v20, %v1514_v19  ;;  %v596_v33 = vpop.permute.xlu0 %595 }
 0x138   : > { %v2187_v26 = vpop.f32.mrf.mxu0 }
 0x139   : > { %1055 = vmatpush1.bf16.msra.mxu1 %v959_v24  ;;  %v601_v29 = vpop.permute.xlu1 %600  ;;  %v1641_v44 = vadd.f32 %v2187_v26, %v2184_v21 }
 0x13a   : > { %v2190_v28 = vpop.f32.mrf.mxu0  ;;  %1056 = vmatprep.subr.bf16.mxu1 %v1817_v1 }
 0x13c   : > { %v2194_v32 = vpop.f32.mrf.mxu0 }
 0x13d   : > { %1057 = vmatpush1.bf16.msra.mxu1 %v958_v31  ;;  %v1644_v30 = vadd.f32 %v2194_v32, %v2190_v28  ;;  %v591_v0 = vpop.permute.xlu1 %590 }
 0x13e   : > { %v1645_v42 = vpop.f32.mrf.mxu0  ;;  %1058 = vmatprep.subr.bf16.mxu1 %v1817_v1  ;;  %v865_v28 = vadd.f32 %v1641_v44, %v591_v0  ;;  %v1789_v0 = vld [vmem:[%s2287_s5 + $0x10] sm:$0xff]  }
 0x140   : > { %v1646_v40 = vpop.f32.mrf.mxu0  ;;  %v1517_v21 = vclamps-f32 %v865_v28, 1.0  ;;  %v1790_v28 = vld [vmem:[%s2287_s5 + $0x18] sm:$0xff]  }
 0x141   : > { %1059 = vmatpush1.bf16.msra.mxu1 %v957_v46  ;;  %v1647_v60 = vadd.f32 %v1646_v40, %v1645_v42  ;;  %v1638_v42 = vadd.f32 %v2181_v16, %v2177_v12  ;;  %v870_v46 = vadd.f32 %v1644_v30, %v596_v33  ;;  %v1775_v16 = vld [vmem:[%s2285_s3] ss:$8 sps:$4 sm:$0xff]  }
 0x142   : > { %v1648_v47 = vpop.f32.mrf.mxu0  ;;  %1060 = vmatprep.subr.bf16.mxu1 %v1817_v1 }
 0x143   : > { %v873_v61 = vadd.f32 %v1647_v60, %v601_v29  ;;  %v1518_v38 = vclamps-f32 %v870_v46, 1.0 }
 0x144   : > { %v1649_v48 = vpop.f32.mrf.mxu0 }
 0x145   : > { %1061 = vmatpush1.bf16.msra.mxu1 %v956_v39  ;;  %v1650_v57 = vadd.f32 %v1649_v48, %v1648_v47  ;;  %v1519_v32 = vclamps-f32 %v873_v61, 1.0  ;;  %v586_v47 = vpop.permute.xlu0 %585  ;;  %v1778_v48 = vld [vmem:[%s2285_s3 + $0x14] ss:$8 sps:$4 sm:$0xff]  }
 0x146   : > { %v1651_v3 = vpop.f32.mrf.mxu0  ;;  %1062 = vmatprep.subr.bf16.mxu1 %v1817_v1  ;;  %v862_v63 = vadd.f32 %v1638_v42, %v586_v47 }
 0x147   : > { %v878_v31 = vadd.f32 %v1650_v57, %v606_v22  ;;  %v961_v26 = vpack.c.bf16 %v1519_v32, %v1518_v38  ;;  %v1791_v32 = vld [vmem:[%s2289_s7] sm:$0xff]  }
 0x148   : > { %v1652_v50 = vpop.f32.mrf.mxu0  ;;  %v1516_v39 = vclamps-f32 %v862_v63, 1.0 }
 0x149   : > { %1063 = vmatpush1.bf16.msra.mxu1 %v955_v2  ;;  %v1653_v19 = vadd.f32 %v1652_v50, %v1651_v3  ;;  %v1520_v40 = vclamps-f32 %v878_v31, 1.0  ;;  %v1784_v3 = vld [vmem:[%s2285_s3 + $0x34] ss:$8 sps:$4 sm:$0xff]   ;;  %v1787_v2 = vld [vmem:[%s2287_s5] sm:$0xff]  }
 0x14a   : > { %v1654_v52 = vpop.f32.mrf.mxu0  ;;  %1064 = vmatprep.subr.bf16.mxu1 %v1817_v1  ;;  %v960_v12 = vpack.c.bf16 %v1517_v21, %v1516_v39 }
 0x14c   : > { %v1655_v53 = vpop.f32.mrf.mxu0 }
 0x14d   : > { %1065 = vmatpush1.bf16.msra.mxu1 %v954_v5  ;;  %v1656_v14 = vadd.f32 %v1655_v53, %v1654_v52 }
 0x14e   : > { %v1657_v55 = vpop.f32.mrf.mxu0  ;;  %1066 = vmatprep.subr.bf16.mxu1 %v1817_v1 }
 0x14f   : > { %v886_v23 = vadd.f32 %v1656_v14, %v616_v9 }
 0x150   : > { %v1658_v34 = vpop.f32.mrf.mxu0 }
 0x151   : > { %1067 = vmatpush1.bf16.msra.mxu1 %v2174_v36  ;;  %v1659_v11 = vadd.f32 %v1658_v34, %v1657_v55  ;;  %v1522_v62 = vclamps-f32 %v886_v23, 1.0  ;;  %v1003_v34 = vpop.permute.xlu1 %1002 }
 0x152   : > { %v1660_v56 = vpop.f32.mrf.mxu0  ;;  %1068 = vmatprep.subr.bf16.mxu1 %v1817_v1 }
 0x153   : > { %v889_v36 = vadd.f32 %v1659_v11, %v621_v6  ;;  %v998_v6 = vpop.permute.xlu0 %997 }
 0x154   : > { %v1661_v7 = vpop.f32.mrf.mxu0 }
 0x155   : > { %v1662_v8 = vadd.f32 %v1661_v7, %v1660_v56  ;;  %1069 = vmatpush1.bf16.msra.mxu1 %v2170_v25  ;;  %v881_v25 = vadd.f32 %v1653_v19, %v611_v18  ;;  %v1523_v59 = vclamps-f32 %v889_v36, 1.0  ;;  %v993_v9 = vpop.permute.xlu1 %992 }
 0x156   : > { %v1663_v10 = vpop.f32.mrf.mxu0  ;;  %1076 = vmatprep.subr.bf16.mxu1 %v1817_v1 }
 0x157   : > { %v894_v15 = vadd.f32 %v1662_v8, %v626_v4  ;;  %v1521_v43 = vclamps-f32 %v881_v25, 1.0  ;;  %v963_v45 = vpack.c.bf16 %v1523_v59, %v1522_v62  ;;  %v988_v11 = vpop.permute.xlu0 %987 }
 0x158   : > { %v1664_v13 = vpop.f32.mrf.mxu0 }
 0x159   : > { %v1665_v17 = vadd.f32 %v1664_v13, %v1663_v10  ;;  %v1524_v24 = vclamps-f32 %v894_v15, 1.0  ;;  %v962_v41 = vpack.c.bf16 %v1521_v43, %v1520_v40  ;;  %v983_v18 = vpop.permute.xlu1 %982  ;;  %v1788_v40 = vld [vmem:[%s2287_s5 + $0x8] sm:$0xff]  }
 0x15b   : > { %v897_v20 = vadd.f32 %v1665_v17, %v631_v54  ;;  %v978_v22 = vpop.permute.xlu0 %977 }
 0x15d   : > { %v1525_v27 = vclamps-f32 %v897_v20, 1.0  ;;  %v973_v29 = vpop.permute.xlu1 %972 }
 0x15f   : > { %v964_v58 = vpack.c.bf16 %v1525_v27, %v1524_v24  ;;  %v968_v33 = vpop.permute.xlu0 %967 }
 0x161   : > { %1077 = vmatpush2.bf16.msra.mxu1 %v964_v58 }
 0x162   : > { %1078 = vmatprep.subr.bf16.mxu1 %v1817_v1 }
 0x163   : > { %v1172_v63 = vpop.permute.xlu0 %1171 }
 0x165   : > { %1079 = vmatpush2.bf16.msra.mxu1 %v963_v45 }
 0x166   : > { %1080 = vmatprep.subr.bf16.mxu1 %v1817_v1 }
 0x169   : > { %1081 = vmatpush2.bf16.msra.mxu1 %v962_v41  ;;  %v1177_v41 = vpop.permute.xlu1 %1176 }
 0x16a   : > { %1082 = vmatprep.subr.bf16.mxu1 %v1817_v1 }
 0x16d   : > { %1083 = vmatpush2.bf16.msra.mxu1 %v961_v26  ;;  %v1167_v26 = vpop.permute.xlu1 %1166 }
 0x16e   : > { %1084 = vmatprep.subr.bf16.mxu1 %v1817_v1  ;;  %v1781_v1 = vld [vmem:[%s2285_s3 + $0x24] ss:$8 sps:$4 sm:$0xff]  }
 0x171   : > { %1085 = vmatpush2.bf16.msra.mxu1 %v960_v12  ;;  %v1162_v12 = vpop.permute.xlu0 %1161 }
 0x174   : > { %1087 = vmatmul.mubr.bf16.vlgmr.msra.gmra.mxu1 %v1775_v16 }
 0x175   : > { %1535 = vmatprep.mubr.msk.bf16.mxu1 %vm1041_vm0, %v1778_v48 }
 0x17c   : > { %1095 = vmatmul.mubr.bf16.gmra.mxu1 %v1780_v35 }
 0x17d   : > { %1536 = vmatprep.mubr.msk.bf16.mxu1 %vm1041_vm0, %v1781_v1  ;;  %v1157_v1 = vpop.permute.xlu1 %1156 }
 0x184   : > { %1103 = vmatmul.mubr.bf16.gmra.mxu1 %v1783_v37 }
 0x185   : > { %1537 = vmatprep.mubr.msk.bf16.mxu1 %vm1041_vm0, %v1784_v3 }
 0x18c   : > { %1111 = vmatmul.mubr.bf16.gmra.mxu1 %v1786_v49 }
 0x18d   : > { %1688 = vmatprep.mubr.msk.bf16.mxu1 %vm1199_vm1, %v1787_v2  ;;  %v1152_v2 = vpop.permute.xlu0 %1151 }
 0x234   : > { %v1088_v50 = vpop.f32.mrf.mxu1 }
 0x235   : > { %v1089_v44 = vadd.f32 %v1088_v50, %v968_v33 }
 0x236   : > { %v1090_v51 = vpop.f32.mrf.mxu1 }
 0x237   : > { %v1538_v42 = vclamps-f32 %v1089_v44, 1.0 }
 0x238   : > { %v1091_v52 = vpop.f32.mrf.mxu1 }
 0x239   : > { %v1092_v30 = vadd.f32 %v1091_v52, %v973_v29 }
 0x23a   : > { %v1093_v5 = vpop.f32.mrf.mxu1 }
 0x23b   : > { %v1539_v43 = vclamps-f32 %v1092_v30, 1.0 }
 0x23c   : > { %v1096_v53 = vpop.f32.mrf.mxu1 }
 0x23d   : > { %v1097_v25 = vadd.f32 %v1096_v53, %v978_v22  ;;  %v1135_v46 = vpack.c.bf16 %v1539_v43, %v1538_v42 }
 0x23e   : > { %v1098_v54 = vpop.f32.mrf.mxu1 }
 0x23f   : > { %v1540_v61 = vclamps-f32 %v1097_v25, 1.0 }
 0x240   : > { %v1099_v55 = vpop.f32.mrf.mxu1 }
 0x241   : > { %v1100_v23 = vadd.f32 %v1099_v55, %v983_v18  ;;  %v1792_v18 = vld [vmem:[%s2289_s7 + $0x8] ss:$0 sps:$4 sm:$0x33]  }
 0x242   : > { %v1101_v4 = vpop.f32.mrf.mxu1 }
 0x243   : > { %v1541_v31 = vclamps-f32 %v1100_v23, 1.0 }
 0x244   : > { %v1104_v56 = vpop.f32.mrf.mxu1 }
 0x245   : > { %v1105_v36 = vadd.f32 %v1104_v56, %v988_v11  ;;  %v1136_v45 = vpack.c.bf16 %v1541_v31, %v1540_v61  ;;  %v1147_v56 = vpop.permute.xlu1 %1146 }
 0x246   : > { %v1106_v7 = vpop.f32.mrf.mxu1 }
 0x247   : > { %v1542_v59 = vclamps-f32 %v1105_v36, 1.0 }
 0x248   : > { %v1107_v8 = vpop.f32.mrf.mxu1 }
 0x249   : > { %v1108_v15 = vadd.f32 %v1107_v8, %v993_v9  ;;  %v1142_v9 = vpop.permute.xlu0 %1141  ;;  %v1305_v25 = vpop.permute.xlu1 %1304 }
 0x24a   : > { %v1109_v10 = vpop.f32.mrf.mxu1 }
 0x24b   : > { %v1543_v24 = vclamps-f32 %v1108_v15, 1.0 }
 0x24c   : > { %v1112_v13 = vpop.f32.mrf.mxu1 }
 0x24d   : > { %v1113_v17 = vadd.f32 %v1112_v13, %v998_v6  ;;  %v1137_v62 = vpack.c.bf16 %v1543_v24, %v1542_v59 }
 0x24e   : > { %v1114_v14 = vpop.f32.mrf.mxu1 }
 0x24f   : > { %v1544_v27 = vclamps-f32 %v1113_v17, 1.0 }
 0x250   : > { %v1115_v19 = vpop.f32.mrf.mxu1 }
 0x251   : > { %v1116_v20 = vadd.f32 %v1115_v19, %v1003_v34  ;;  %v1300_v19 = vpop.permute.xlu0 %1299 }
 0x252   : > { %v1117_v57 = vpop.f32.mrf.mxu1 }
 0x253   : > { %v1545_v60 = vclamps-f32 %v1116_v20, 1.0 }
 0x255   : > { %v1138_v58 = vpack.c.bf16 %v1545_v60, %v1544_v27  ;;  %v1310_v36 = vpop.permute.xlu0 %1309 }
 0x257   : > { %1680 = vmatprep.subr.bf16.mxu1 %v1138_v58 }
 0x258   : > { %1681 = vmatpush3.bf16.msra.mxu1 %v1138_v58 }
 0x259   : > { %1682 = vmatprep.subr.bf16.mxu1 %v1137_v62 }
 0x25c   : > { %1683 = vmatpush3.bf16.msra.mxu1 %v1137_v62 }
 0x25d   : > { %1684 = vmatprep.subr.bf16.mxu1 %v1136_v45 }
 0x260   : > { %1685 = vmatpush3.bf16.msra.mxu1 %v1136_v45 }
 0x261   : > { %1686 = vmatprep.subr.bf16.mxu1 %v1135_v46 }
 0x264   : > { %1687 = vmatpush3.bf16.msra.mxu1 %v1135_v46 }
 0x267   : > { %1689 = vmatmul.mubr.msk.bf16.vlgmr.msra.gmra.mxu1 %vm1199_vm1, %v1788_v40 }
 0x268   : > { %1692 = vmatprep.mubr.msk.bf16.mxu1 %vm1199_vm1, %v1789_v0 }
 0x26f   : > { %1693 = vmatmul.mubr.msk.bf16.gmra.mxu1 %vm1199_vm1, %v1790_v28 }
 0x270   : > { %1704 = vmatprep.mubr.msk.bf16.mxu1 %vm1199_vm1, %v1791_v32 }
 0x327   : > { %v1690_v47 = vpop.f32.mrf.mxu1 }
 0x328   : > { %v1255_v54 = vadd.f32 %v1690_v47, %v1152_v2 }
 0x329   : > { %v1246_v38 = vpop.f32.mrf.mxu1 }
 0x32a   : > { %v1556_v10 = vclamps-f32 %v1255_v54, 1.0  ;;  %v1247_v11 = vadd.f32 %v1246_v38, %v1142_v9 }
 0x32b   : > { %v1691_v21 = vpop.f32.mrf.mxu1 }
 0x32c   : > { %v1258_v51 = vadd.f32 %v1691_v21, %v1157_v1  ;;  %v1554_v15 = vclamps-f32 %v1247_v11, 1.0 }
 0x32d   : > { %v1249_v39 = vpop.f32.mrf.mxu1 }
 0x32e   : > { %v1557_v6 = vclamps-f32 %v1258_v51, 1.0  ;;  %v1250_v7 = vadd.f32 %v1249_v39, %v1147_v56 }
 0x32f   : > { %v1694_v16 = vpop.f32.mrf.mxu1 }
 0x330   : > { %v1271_v35 = vadd.f32 %v1694_v16, %v1172_v63  ;;  %v1294_v13 = vpack.c.bf16 %v1557_v6, %v1556_v10  ;;  %v1555_v14 = vclamps-f32 %v1250_v7, 1.0 }
 0x331   : > { %v1262_v48 = vpop.f32.mrf.mxu1 }
 0x332   : > { %v1263_v3 = vadd.f32 %v1262_v48, %v1162_v12  ;;  %v1560_v52 = vclamps-f32 %v1271_v35, 1.0  ;;  %v1293_v17 = vpack.c.bf16 %v1555_v14, %v1554_v15 }
 0x333   : > { %v1695_v37 = vpop.f32.mrf.mxu1 }
 0x334   : > { %v1274_v49 = vadd.f32 %v1695_v37, %v1177_v41  ;;  %v1558_v55 = vclamps-f32 %v1263_v3, 1.0 }
 0x335   : > { %v1265_v50 = vpop.f32.mrf.mxu1 }
 0x336   : > { %v1561_v5 = vclamps-f32 %v1274_v49, 1.0  ;;  %v1266_v53 = vadd.f32 %v1265_v50, %v1167_v26 }
 0x338   : > { %v1296_v4 = vpack.c.bf16 %v1561_v5, %v1560_v52  ;;  %v1559_v34 = vclamps-f32 %v1266_v53, 1.0 }
 0x33a   : > { %v1295_v8 = vpack.c.bf16 %v1559_v34, %v1558_v55  ;;  %1696 = vmatprep.subr.bf16.mxu1 %v1296_v4 }
 0x33b   : > { %1697 = vmatpush3.bf16.msra.mxu1 %v1296_v4 }
 0x33c   : > { %1698 = vmatprep.subr.bf16.mxu1 %v1295_v8 }
 0x33f   : > { %1699 = vmatpush3.bf16.msra.mxu1 %v1295_v8 }
 0x340   : > { %1700 = vmatprep.subr.bf16.mxu1 %v1294_v13 }
 0x343   : > { %1701 = vmatpush3.bf16.msra.mxu1 %v1294_v13 }
 0x344   : > { %1702 = vmatprep.subr.bf16.mxu1 %v1293_v17 }
 0x347   : > { %1703 = vmatpush3.bf16.msra.mxu1 %v1293_v17 }
 0x34a   : > { %1705 = vmatmul.mubr.msk.bf16.vlgmr.msra.gmra.mxu1 %vm1199_vm1, %v1792_v18 }
 0x40a   : > { %v1706_v20 = vpop.f32.mrf.mxu1 }
 0x40b   : > { %v1369_v22 = vadd.f32 %v1706_v20, %v1310_v36 }
 0x40c   : > { %v1360_v57 = vpop.f32.mrf.mxu1 }
 0x40d   : > { %v1568_v23 = vclamps-f32 %v1369_v22, 1.0  ;;  %v1361_v24 = vadd.f32 %v1360_v57, %v1300_v19 }
 0x40e   : > { %v1707_v27 = vpop.f32.mrf.mxu1 }
 0x40f   : > { %1382 = vst [vmem:[%s363_s21 + $0x10] sm:$0xf] %v1568_v23  ;;  %v1566_v60 = vclamps-f32 %v1361_v24, 1.0 }
 0x410   : > { %v1363_v59 = vpop.f32.mrf.mxu1 }
 0x411   : > { %1380 = vst [vmem:[%s363_s21] sm:$0xff] %v1566_v60  ;;  %v1364_v58 = vadd.f32 %v1363_v59, %v1305_v25 }
 0x413   : > { %v1567_v29 = vclamps-f32 %v1364_v58, 1.0 }
 0x415   : > { %1381 = vst [vmem:[%s363_s21 + $0x8] sm:$0xff] %v1567_v29 }
 0x416 PF: > { %s19_s11 = sadd.s32 1, %s1815_s11   ;;  %s2292_s30 = smov %s1811_s10 }
 0x417   : > { %p16_p5 = scmp.ge.s32.totalorder %s19_s11, 4   ;;  %s2293_s10 = smov %s2295_s12 }
 0x419   :  { %18 = sbr.rel (!%p16_p5) target bundleno = 2 (0x2), region = 86 }

</bundles_post_ra>
